<compile_context>
chip_gen: v7x
topology: tpu7x:2x2x1
jax: 0.10.0
libtpu: 0.0.40
codegen_flags: <defaults>
</compile_context>

<pallas_src>
import functools
import math

import jax
import jax.numpy as jnp
from jax import lax
from jax.experimental import pallas as pl
from jax.experimental.pallas import tpu as pltpu

NEG_SLOPE = 0.01   # nn.LeakyReLU() default
GN_EPS = 1e-5      # nn.GroupNorm default eps


# --------------------------------------------------------------------------------------
# small helpers
# --------------------------------------------------------------------------------------
def _apply_act(x, act):
    if act == "none":
        return x
    if act == "relu":
        return jnp.maximum(x, 0.0)
    if act == "lrelu":
        return jnp.where(x >= 0, x, NEG_SLOPE * x)
    if act == "sigmoid":
        return jax.nn.sigmoid(x)
    raise ValueError(act)


# --------------------------------------------------------------------------------------
# Pallas kernels
# --------------------------------------------------------------------------------------
def _conv_stream_kernel(*refs, n_in, offs, lout, act, has_res):
    """Streaming-tap conv for one sample.

    refs = [x_0 .. x_{n-1}, w_0 .. w_{n-1}, bias, (residual), out]
      x_i : (1, Cin_i, Sp) f32   padded, flattened input map
      w_i : (T, Cout, Cin_i) bf16 tap-major weights
      bias: (Cout, 1) f32
      out : (1, Cout, lout) f32  (lout = H * Wp, lane-dense)
    """
    x_refs = refs[:n_in]
    w_refs = refs[n_in:2 * n_in]
    b_ref = refs[2 * n_in]
    res_ref = refs[2 * n_in + 1] if has_res else None
    o_ref = refs[-1]
    cout = o_ref.shape[1]

    acc = jnp.zeros((cout, lout), jnp.float32)
    for x_ref, w_ref in zip(x_refs, w_refs):
        x = x_ref[0]                                   # (Cin_i, Sp), loaded once
        sp = x.shape[1]
        for t, off in enumerate(offs):
            # shifted window x[:, off:off+lout] realized as a cyclic lane roll + prefix
            # slice (wrapped elements land beyond `lout` and are dropped).
            xt = x if off == 0 else pltpu.roll(x, shift=sp - off, axis=1)
            a = xt[:, :lout].astype(jnp.bfloat16)
            acc = acc + jnp.dot(w_ref[t], a, preferred_element_type=jnp.float32)
    acc = acc + b_ref[...]
    acc = _apply_act(acc, act)
    if has_res:
        acc = acc + res_ref[0]
    o_ref[0] = acc


def _att_epilogue_kernel(y_ref, gamma_ref, beta_ref, w1t_ref, b1_ref, w2t_ref, b2_ref,
                         saw_ref, sab_ref, o_ref, *, H, W, sa_k, sa_dil, cpg, num_groups):
    """GroupNorm + LeakyReLU + ChannelAttention + SpatialAttention for one sample.

    y: (1, C, S) with S = H*W.  The 7x7 SA conv runs in-kernel via roll + masks.
    """
    y = y_ref[0]                                           # (C, S) f32
    C = y.shape[0]
    S = H * W

    # ---- GroupNorm (+ LeakyReLU) -----------------------------------------------------
    s1 = jnp.sum(y, axis=1, keepdims=True)                 # (C, 1)
    s2 = jnp.sum(y * y, axis=1, keepdims=True)             # (C, 1)
    cnt = float(cpg * S)
    gid = lax.broadcasted_iota(jnp.int32, (C, 1), 0) // cpg
    mean_c = jnp.zeros((C, 1), jnp.float32)
    rstd_c = jnp.zeros((C, 1), jnp.float32)
    for g in range(num_groups):
        sel = gid == g
        gmean = jnp.sum(jnp.where(sel, s1, 0.0), keepdims=True) / cnt
        gmsq = jnp.sum(jnp.where(sel, s2, 0.0), keepdims=True) / cnt
        grstd = lax.rsqrt(gmsq - gmean * gmean + GN_EPS)
        mean_c = jnp.where(sel, gmean, mean_c)
        rstd_c = jnp.where(sel, grstd, rstd_c)
    z = (y - mean_c) * rstd_c * gamma_ref[...] + beta_ref[...]
    z = jnp.where(z >= 0, z, NEG_SLOPE * z)

    # ---- Channel attention (CBAM): GAP & GMP over spatial, shared MLP, sigmoid -------
    gap = jnp.mean(z, axis=1, keepdims=True)               # (C, 1)
    gmp = jnp.max(z, axis=1, keepdims=True)                # (C, 1)
    lane2 = lax.broadcasted_iota(jnp.int32, (C, 2), 1)
    v = jnp.where(lane2 == 0, gap, gmp)                    # (C, 2) batched GAP/GMP
    h1 = jnp.maximum(jnp.dot(w1t_ref[...], v, preferred_element_type=jnp.float32)
                     + b1_ref[...], 0.0)                   # (Ch, 2)
    o2 = jnp.dot(w2t_ref[...], h1, preferred_element_type=jnp.float32) + b2_ref[...]
    catt = jax.nn.sigmoid(jnp.sum(o2, axis=1, keepdims=True))   # (C, 1)
    zc = z * catt

    # ---- Spatial attention (CBAM): channel mean+max -> KxK conv -> sigmoid -> scale ---
    cap = jnp.mean(zc, axis=0, keepdims=True)              # (1, S)
    cmx = jnp.max(zc, axis=0, keepdims=True)               # (1, S)
    rowsel = lax.broadcasted_iota(jnp.int32, (2, S), 0)
    pooled = jnp.where(rowsel == 0, cap, cmx)              # (2, S)

    pos = lax.broadcasted_iota(jnp.int32, (1, S), 1)
    wcol = pos % W
    hrow = pos // W
    half = sa_k // 2
    acc = jnp.zeros((1, S), jnp.float32)
    t = 0
    for di in range(-half, half + 1):
        for dj in range(-half, half + 1):
            oy, ox = di * sa_dil, dj * sa_dil
            off = oy * W + ox
            shifted = pooled if off == 0 else pltpu.roll(pooled, shift=(-off) % S, axis=1)
            valid = ((wcol + ox >= 0) & (wcol + ox < W)
                     & (hrow + oy >= 0) & (hrow + oy < H))
            contrib = jnp.sum(shifted * saw_ref[t], axis=0, keepdims=True)   # (1, S)
            acc = acc + jnp.where(valid, contrib, 0.0)
            t += 1
    satt = jax.nn.sigmoid(acc + sab_ref[...])              # (1, S)
    o_ref[0] = zc * satt


def _sandwich_kernel(a_ref, b_ref, x_ref, o_ref):
    """Per-(n, c) slab: out = A @ X @ B (used for AvgPool2d(2) and bilinear 2x up)."""
    x = x_ref[0, 0]                                                  # (H, W)
    t = jnp.dot(x, b_ref[...], preferred_element_type=jnp.float32)   # (H, Wo)
    o_ref[0, 0] = jnp.dot(a_ref[...], t, preferred_element_type=jnp.float32)


def _add_kernel(a_ref, b_ref, o_ref):
    o_ref[...] = a_ref[...] + b_ref[...]


# --------------------------------------------------------------------------------------
# Pallas wrappers
# --------------------------------------------------------------------------------------
def conv2d_stream(xs, w, b, H, W, act="none", dilation=1, residual=None):
    """Conv2d ('same' padding) on channels-first flattened maps, taps streamed in-kernel.

    xs: list of (N, Cin_i, H*W) f32 maps on the same spatial grid (treated as a virtual
        channel concatenation - no HBM concat).  w: (Cout, sum(Cin_i), kh, kw), b: (Cout,)
    Returns (N, Cout, H*W) f32.  `residual` (N, Cout, H*W) is added after the activation.
    """
    N = xs[0].shape[0]
    cins = [int(x.shape[1]) for x in xs]
    Cout, Cin_tot, kh, kw = w.shape
    assert sum(cins) == Cin_tot, (cins, Cin_tot)

    ph, pw = dilation * (kh // 2), dilation * (kw // 2)
    Hp, Wp = H + 2 * ph, W + 2 * pw
    tail = 2 * pw                       # overrun room for the largest tap window
    Sp = Hp * Wp + tail
    Lout = H * Wp                       # padded-width output (extra cols sliced away)
    S = H * W

    xps = []
    for x, cin in zip(xs, cins):
        xi = x.reshape(N, cin, H, W)
        if ph or pw:
            xi = jnp.pad(xi, ((0, 0), (0, 0), (ph, ph), (pw, pw)))
        xi = xi.reshape(N, cin, Hp * Wp)
        if tail:
            xi = jnp.pad(xi, ((0, 0), (0, 0), (0, tail)))
        xps.append(xi)

    offs = tuple(i * dilation * Wp + j * dilation for i in range(kh) for j in range(kw))
    T = kh * kw
    w_parts, c0 = [], 0
    for cin in cins:
        wi = w[:, c0:c0 + cin, :, :]
        wi = jnp.transpose(wi, (2, 3, 0, 1)).reshape(T, Cout, cin).astype(jnp.bfloat16)
        w_parts.append(wi)
        c0 += cin
    bias = b.reshape(Cout, 1).astype(jnp.float32)

    has_res = residual is not None
    if has_res:
        assert ph == 0 and pw == 0 and Lout == S

    in_specs, args = [], []
    for xi, cin in zip(xps, cins):
        in_specs.append(pl.BlockSpec((1, cin, Sp), lambda n: (n, 0, 0)))
        args.append(xi)
    for wi, cin in zip(w_parts, cins):
        in_specs.append(pl.BlockSpec((T, Cout, cin), lambda n: (0, 0, 0)))
        args.append(wi)
    in_specs.append(pl.BlockSpec((Cout, 1), lambda n: (0, 0)))
    args.append(bias)
    if has_res:
        in_specs.append(pl.BlockSpec((1, Cout, S), lambda n: (n, 0, 0)))
        args.append(residual)

    y = pl.pallas_call(
        functools.partial(_conv_stream_kernel, n_in=len(xs), offs=offs,
                          lout=Lout, act=act, has_res=has_res),
        out_shape=jax.ShapeDtypeStruct((N, Cout, Lout), jnp.float32),
        grid_spec=pltpu.PrefetchScalarGridSpec(
            num_scalar_prefetch=0,
            grid=(N,),
            in_specs=in_specs,
            out_specs=pl.BlockSpec((1, Cout, Lout), lambda n: (n, 0, 0)),
        ),
        compiler_params=pltpu.CompilerParams(
            dimension_semantics=("parallel",),
            vmem_limit_bytes=48 * 1024 * 1024,
        ),
    )(*args)

    if pw:
        y = y.reshape(N, Cout, H, Wp)[:, :, :, :W].reshape(N, Cout, S)
    return y


def att_epilogue(y, p, num_groups, H, W, sa_k, sa_dil):
    """Fused GroupNorm + LeakyReLU + ChannelAttention + SpatialAttention."""
    N, C, S = y.shape
    assert S == H * W and C % num_groups == 0
    cpg = C // num_groups
    ca = p["ca"]
    Ch = ca["w1"].shape[1]
    gamma = p["gn_gamma"].reshape(C, 1)
    beta = p["gn_beta"].reshape(C, 1)
    w1t = jnp.transpose(ca["w1"])                               # (Ch, C)
    b1 = ca["b1"].reshape(Ch, 1)
    w2t = jnp.transpose(ca["w2"])                               # (C, Ch)
    b2 = ca["b2"].reshape(C, 1)
    saw = jnp.transpose(p["sa"]["w"][0], (1, 2, 0)).reshape(sa_k * sa_k, 2, 1)
    sab = p["sa"]["b"].reshape(1, 1)

    return pl.pallas_call(
        functools.partial(_att_epilogue_kernel, H=H, W=W, sa_k=sa_k, sa_dil=sa_dil,
                          cpg=cpg, num_groups=num_groups),
        out_shape=jax.ShapeDtypeStruct((N, C, S), jnp.float32),
        grid_spec=pltpu.PrefetchScalarGridSpec(
            num_scalar_prefetch=0,
            grid=(N,),
            in_specs=[
                pl.BlockSpec((1, C, S), lambda n: (n, 0, 0)),
                pl.BlockSpec((C, 1), lambda n: (0, 0)),
                pl.BlockSpec((C, 1), lambda n: (0, 0)),
                pl.BlockSpec((Ch, C), lambda n: (0, 0)),
                pl.BlockSpec((Ch, 1), lambda n: (0, 0)),
                pl.BlockSpec((C, Ch), lambda n: (0, 0)),
                pl.BlockSpec((C, 1), lambda n: (0, 0)),
                pl.BlockSpec((sa_k * sa_k, 2, 1), lambda n: (0, 0, 0)),
                pl.BlockSpec((1, 1), lambda n: (0, 0)),
            ],
            out_specs=pl.BlockSpec((1, C, S), lambda n: (n, 0, 0)),
        ),
        compiler_params=pltpu.CompilerParams(dimension_semantics=("parallel",)),
    )(y, gamma, beta, w1t, b1, w2t, b2, saw, sab)


def spatial_sandwich(x, A, B):
    """x: (N, C, H, W) -> A @ x[n, c] @ B for every (n, c).  Used for pool / upsample."""
    N, C, H, W = x.shape
    Ho, Wo = A.shape[0], B.shape[1]
    return pl.pallas_call(
        _sandwich_kernel,
        out_shape=jax.ShapeDtypeStruct((N, C, Ho, Wo), jnp.float32),
        grid_spec=pltpu.PrefetchScalarGridSpec(
            num_scalar_prefetch=0,
            grid=(N, C),
            in_specs=[
                pl.BlockSpec((Ho, H), lambda n, c: (0, 0)),
                pl.BlockSpec((W, Wo), lambda n, c: (0, 0)),
                pl.BlockSpec((1, 1, H, W), lambda n, c: (n, c, 0, 0)),
            ],
            out_specs=pl.BlockSpec((1, 1, Ho, Wo), lambda n, c: (n, c, 0, 0)),
        ),
        compiler_params=pltpu.CompilerParams(dimension_semantics=("parallel", "parallel")),
    )(A, B, x)


def elementwise_add(a, b):
    N, C, S = a.shape
    return pl.pallas_call(
        _add_kernel,
        out_shape=jax.ShapeDtypeStruct((N, C, S), jnp.float32),
        grid_spec=pltpu.PrefetchScalarGridSpec(
            num_scalar_prefetch=0, grid=(N,),
            in_specs=[pl.BlockSpec((1, C, S), lambda n: (n, 0, 0)),
                      pl.BlockSpec((1, C, S), lambda n: (n, 0, 0))],
            out_specs=pl.BlockSpec((1, C, S), lambda n: (n, 0, 0)),
        ),
        compiler_params=pltpu.CompilerParams(dimension_semantics=("parallel",)),
    )(a, b)


# --------------------------------------------------------------------------------------
# pooling / upsampling matrices (separable, 1-D each)
# --------------------------------------------------------------------------------------
def _avgpool_matrices(H, W):
    A = jnp.zeros((H // 2, H), jnp.float32)
    r = jnp.arange(H // 2)
    A = A.at[r, 2 * r].set(0.5).at[r, 2 * r + 1].set(0.5)
    B = jnp.zeros((W, W // 2), jnp.float32)
    c = jnp.arange(W // 2)
    B = B.at[2 * c, c].set(0.5).at[2 * c + 1, c].set(0.5)
    return A, B


def _bilinear_matrix_1d(h_in):
    # F.interpolate(scale_factor=2, mode='bilinear', align_corners=False) along one axis.
    h_out = 2 * h_in
    i = jnp.arange(h_out, dtype=jnp.float32)
    src = jnp.maximum((i + 0.5) * 0.5 - 0.5, 0.0)
    i0 = jnp.floor(src).astype(jnp.int32)
    frac = src - i0.astype(jnp.float32)
    i1 = jnp.minimum(i0 + 1, h_in - 1)
    i0 = jnp.minimum(i0, h_in - 1)
    m = jnp.zeros((h_out, h_in), jnp.float32)
    rows = jnp.arange(h_out)
    m = m.at[rows, i0].add(1.0 - frac)
    m = m.at[rows, i1].add(frac)
    return m


# --------------------------------------------------------------------------------------
# Parameter construction (deterministic, synthetic)
# --------------------------------------------------------------------------------------
class ParamGen:
    def __init__(self, key):
        self.key = key

    def next(self, shape, scale):
        self.key, sub = jax.random.split(self.key)
        return (jax.random.normal(sub, shape, dtype=jnp.float32) * scale).astype(jnp.float32)


def conv_params(pg, cin, cout, kh, kw, bias=True):
    scale = 1.0 / math.sqrt(cin * kh * kw)
    w = pg.next((cout, cin, kh, kw), scale)
    b = pg.next((cout,), scale) if bias else jnp.zeros((cout,), jnp.float32)
    return {"w": w, "b": b}


def att_block_params(pg, cin, cout, reduction, sa_k):
    hid = max(1, cout // reduction)
    return {
        "conv1": conv_params(pg, cin, cout, 3, 3, True),
        "conv2": conv_params(pg, cout, cout, 3, 3, False),
        "gn_gamma": jnp.ones((cout,), jnp.float32),
        "gn_beta": jnp.zeros((cout,), jnp.float32),
        "ca": {
            "w1": pg.next((cout, hid), 1.0 / math.sqrt(cout)),
            "b1": pg.next((hid,), 0.01),
            "w2": pg.next((hid, cout), 1.0 / math.sqrt(hid)),
            "b2": pg.next((cout,), 0.01),
        },
        "sa": {
            "w": pg.next((1, 2, sa_k, sa_k), 1.0 / math.sqrt(2 * sa_k * sa_k)),
            "b": pg.next((1,), 0.01),
        },
    }


def build_unet_params(pg, in_chans, out_chans, chans, num_pool_layers, reduction,
                      min_ext_size, max_ext_size, sa_kernel_size):
    # SignalExtractor (ext_mode='1NN1')
    ext_layers = []
    if min_ext_size <= 1:
        ext_layers.append({"kind": "single",
                           "conv": conv_params(pg, in_chans, chans, 1, 1, True)})
    mes = max(min_ext_size, 3)
    for size in range(mes, max_ext_size + 1, 2):
        ext_layers.append({
            "kind": "pair",
            "conv_a": conv_params(pg, in_chans, chans, 1, size, True),
            "conv_b": conv_params(pg, chans, chans, size, 1, True),
        })
    ksse = {"ext_layers": ext_layers,
            "conv1x1": conv_params(pg, chans * len(ext_layers), chans, 1, 1, True)}

    params = {"down": [ksse]}
    ch = chans
    for _ in range(num_pool_layers - 1):
        params["down"].append(att_block_params(pg, ch, ch * 2, reduction, sa_kernel_size))
        ch *= 2
    params["mid"] = att_block_params(pg, ch, ch, reduction, sa_kernel_size)
    params["up"] = []
    for _ in range(num_pool_layers - 1):
        params["up"].append(att_block_params(pg, ch * 2, ch // 2, reduction, sa_kernel_size))
        ch //= 2
    params["up"].append(att_block_params(pg, ch * 2, ch, reduction, sa_kernel_size))
    assert ch == chans, "Channel indexing error!"
    params["conv_last"] = conv_params(pg, ch, out_chans, 1, 1, True)
    return params


# --------------------------------------------------------------------------------------
# Module forward passes (glue orchestrating the Pallas kernels)
# --------------------------------------------------------------------------------------
def signal_extractor_forward(p, x, H, W):
    outs = []
    for ext in p["ext_layers"]:
        if ext["kind"] == "single":
            # ReLU after concat == ReLU per branch (elementwise), so fuse it here.
            y = conv2d_stream([x], ext["conv"]["w"], ext["conv"]["b"], H, W, act="relu")
        else:
            y = conv2d_stream([x], ext["conv_a"]["w"], ext["conv_a"]["b"], H, W, act="none")
            y = conv2d_stream([y], ext["conv_b"]["w"], ext["conv_b"]["b"], H, W, act="relu")
        outs.append(y)
    # 1x1 fusion conv over the *virtual* channel concat of all branches + ReLU.
    return conv2d_stream(outs, p["conv1x1"]["w"], p["conv1x1"]["b"], H, W, act="relu")


def att_conv_block_forward(p, xs, H, W, num_groups, sa_k, sa_dil):
    y = conv2d_stream(xs, p["conv1"]["w"], p["conv1"]["b"], H, W, act="lrelu")
    y = conv2d_stream([y], p["conv2"]["w"], p["conv2"]["b"], H, W, act="none")
    return att_epilogue(y, p, num_groups, H, W, sa_k, sa_dil)


def unet_ksse_forward(params, x_nchw, *, num_groups, sa_k, sa_dil,
                      use_residual=True, use_skip=False):
    N, Cin, H, W = x_nchw.shape
    x0 = x_nchw.astype(jnp.float32).reshape(N, Cin, H * W)   # NCHW == (N, C, HW) layout
    stack, skips = [], []
    out, h, w = x0, H, W
    for i, layer in enumerate(params["down"]):
        if i == 0:
            out = signal_extractor_forward(layer, out, h, w)
        else:
            out = att_conv_block_forward(layer, [out], h, w, num_groups, sa_k, sa_dil)
        stack.append((out, h, w))
        pa, pb = _avgpool_matrices(h, w)                      # pool_type='avg'
        out = spatial_sandwich(out.reshape(N, -1, h, w), pa, pb)
        h, w = h // 2, w // 2
        out = out.reshape(N, -1, h * w)
        if use_skip:
            skips.append(out)
    out = att_conv_block_forward(params["mid"], [out], h, w, num_groups, sa_k, sa_dil)
    for layer in params["up"]:
        if use_skip:
            out = elementwise_add(out, skips.pop())
        ua = _bilinear_matrix_1d(h)
        ub = jnp.transpose(_bilinear_matrix_1d(w))
        out = spatial_sandwich(out.reshape(N, -1, h, w), ua, ub)
        h, w = 2 * h, 2 * w
        out = out.reshape(N, -1, h * w)
        skip_t, hs, ws = stack.pop()
        assert (hs, ws) == (h, w)
        # decoder concat fused into the conv as two inputs (weights split along Cin).
        out = att_conv_block_forward(layer, [out, skip_t], h, w, num_groups, sa_k, sa_dil)
    out = conv2d_stream([out], params["conv_last"]["w"], params["conv_last"]["b"], h, w,
                        act="none", residual=(x0 if use_residual else None))
    return out.reshape(N, -1, H, W)                           # already NCHW


# --------------------------------------------------------------------------------------
# Main
# --------------------------------------------------------------------------------------
if __name__ == "__main__":
    in_chans, out_chans, chans = 2, 2, 8
    num_pool_layers, num_groups = 2, 4
    sa_kernel_size, sa_dilation = 7, 1

    x = jax.random.normal(jax.random.PRNGKey(0), (2, in_chans, 16, 16), dtype=jnp.float32)

    pg = ParamGen(jax.random.PRNGKey(1))
    params = build_unet_params(
        pg, in_chans=in_chans, out_chans=out_chans, chans=chans,
        num_pool_layers=num_pool_layers, reduction=2,
        min_ext_size=1, max_ext_size=5, sa_kernel_size=sa_kernel_size,
    )

    out = unet_ksse_forward(params, x, num_groups=num_groups, sa_k=sa_kernel_size,
                            sa_dil=sa_dilation, use_residual=True, use_skip=False)
    out = jax.block_until_ready(out)
    assert out.shape == (2, out_chans, 16, 16), out.shape
    assert jnp.isfinite(out).all()
    print("KERNEL_OK")
</pallas_src>

<mosaic_0001>
module attributes {stable_mosaic.version = 11 : i64} {
  func.func @_conv_stream_kernel(%arg0: i32, %arg1: memref<1x2x256xf32, #tpu.memory_space<vmem>>, %arg2: memref<1x8x2xbf16, #tpu.memory_space<vmem>>, %arg3: memref<8x1xf32, #tpu.memory_space<vmem>>, %arg4: memref<1x8x256xf32, #tpu.memory_space<vmem>>) attributes {dimension_semantics = [#tpu.dimension_semantics<parallel>], iteration_bounds = array<i64: 2>, scalar_prefetch = 0 : i64, scratch_operands = 0 : i64, tpu.core_type = #tpu.core_type<tc>, window_params = [{transform_indices = @transform_0, window_bounds = array<i64: 1, 2, 256>}, {pipeline_mode = #tpu.pipeline_mode<synchronous>, transform_indices = @transform_1, window_bounds = array<i64: 1, 8, 2>}, {pipeline_mode = #tpu.pipeline_mode<synchronous>, transform_indices = @transform_2, window_bounds = array<i64: 8, 1>}, {transform_indices = @transform_3, window_bounds = array<i64: 1, 8, 256>}]} {
    %cst = arith.constant 0.000000e+00 : f32
    %0 = vector.broadcast %cst : f32 to vector<8x256xf32>
    %c0 = arith.constant 0 : index
    %c0_0 = arith.constant 0 : index
    %c0_1 = arith.constant 0 : index
    %1 = vector.load %arg1[%c0, %c0_0, %c0_1] : memref<1x2x256xf32, #tpu.memory_space<vmem>>, vector<1x2x256xf32>
    %2 = vector.shape_cast %1 : vector<1x2x256xf32> to vector<2x256xf32>
    %3 = arith.truncf %2 : vector<2x256xf32> to vector<2x256xbf16>
    %c0_2 = arith.constant 0 : index
    %c0_3 = arith.constant 0 : index
    %c0_4 = arith.constant 0 : index
    %4 = vector.load %arg2[%c0_2, %c0_3, %c0_4] : memref<1x8x2xbf16, #tpu.memory_space<vmem>>, vector<1x8x2xbf16>
    %5 = vector.shape_cast %4 : vector<1x8x2xbf16> to vector<8x2xbf16>
    %cst_5 = arith.constant dense<0.000000e+00> : vector<8x256xf32>
    %6 = tpu.matmul %5, %3, %cst_5 {dimension_numbers = #tpu.dot_dimension_numbers<[1], [0], [0], [1], [0, 0, 1, 1], [], []>} : vector<8x2xbf16>, vector<2x256xbf16>, vector<8x256xf32> -> vector<8x256xf32>
    %7 = arith.addf %0, %6 : vector<8x256xf32>
    %c0_6 = arith.constant 0 : index
    %c0_7 = arith.constant 0 : index
    %8 = vector.load %arg3[%c0_6, %c0_7] : memref<8x1xf32, #tpu.memory_space<vmem>>, vector<8x1xf32>
    %9 = vector.broadcast %8 : vector<8x1xf32> to vector<8x256xf32>
    %10 = arith.addf %7, %9 : vector<8x256xf32>
    %cst_8 = arith.constant 0.000000e+00 : f32
    %11 = vector.broadcast %cst_8 : f32 to vector<8x256xf32>
    %12 = arith.maximumf %10, %11 : vector<8x256xf32>
    %c0_9 = arith.constant 0 : index
    %c0_10 = arith.constant 0 : index
    %c0_11 = arith.constant 0 : index
    %13 = vector.load %arg4[%c0_9, %c0_10, %c0_11] : memref<1x8x256xf32, #tpu.memory_space<vmem>>, vector<1x8x256xf32>
    %14 = vector.shape_cast %13 : vector<1x8x256xf32> to vector<8x256xf32>
    %15 = vector.shape_cast %12 : vector<8x256xf32> to vector<1x8x256xf32>
    tpu.vector_store %arg4[%c0_9, %c0_10, %c0_11], %15 {strides = array<i32>} : memref<1x8x256xf32, #tpu.memory_space<vmem>>, vector<1x8x256xf32>,
    return
  }
  func.func @transform_0(%arg0: i32) -> (i32, i32, i32) {
    %c0_i32 = arith.constant 0 : i32
    %c0_i32_0 = arith.constant 0 : i32
    %c0_i32_1 = arith.constant 0 : i32
    return %arg0, %c0_i32, %c0_i32_0 : i32, i32, i32
  }
  func.func @transform_1(%arg0: i32) -> (i32, i32, i32) {
    %c0_i32 = arith.constant 0 : i32
    %c0_i32_0 = arith.constant 0 : i32
    %c0_i32_1 = arith.constant 0 : i32
    %c0_i32_2 = arith.constant 0 : i32
    return %c0_i32, %c0_i32_0, %c0_i32_1 : i32, i32, i32
  }
  func.func @transform_2(%arg0: i32) -> (i32, i32) {
    %c0_i32 = arith.constant 0 : i32
    %c0_i32_0 = arith.constant 0 : i32
    %c0_i32_1 = arith.constant 0 : i32
    return %c0_i32, %c0_i32_0 : i32, i32
  }
  func.func @transform_3(%arg0: i32) -> (i32, i32, i32) {
    %c0_i32 = arith.constant 0 : i32
    %c0_i32_0 = arith.constant 0 : i32
    %c0_i32_1 = arith.constant 0 : i32
    return %arg0, %c0_i32, %c0_i32_0 : i32, i32, i32
  }
}

</mosaic_0001>

<bundles_post_ra>
// kernel: tpu_custom_call.1
= control target key start
LH: loop header
LB: loop body
LE: loop exit
PB: predicated region body
PF: predicated region fallthrough
CT: control target
= control target key end

     0   :  { %8 = vsyncpa [#allocation3], 0  ;;  %s571_s0 = inlined_call_operand.vmem [shape: f32[2,2,256], index: 0, kind: input, shape index: {}]   ;;  %s572_s1 = inlined_call_operand.vmem [shape: bf16[1,8,2], index: 1, kind: input, shape index: {}]   ;;  %s573_s2 = inlined_call_operand.vmem [shape: f32[8,1], index: 2, kind: input, shape index: {}]   ;;  %s574_s3 = inlined_call_operand.hbm [shape: f32[2,8,256], index: 3, kind: output, shape index: {}]  }
   0x1   :  { %10 = vsyncpa [#allocation3 + $0x1], 0  ;;  %s465_s12 = smov 0   ;;  %s467_s13 = smov 0  }
   0x2   :  { %s469_s14 = smov 0   ;;  %s471_s15 = smov 0  }
   0x3 LB: > { %s486_s16 = sadd.s32 4294967295, %s441_s15   ;;  %s321_s17 = sadd.s32 4294967294, %s441_s15   ;;  %s441_s15 = sphi %s471_s15, %s580_s15   ;;  %s437_s14 = sphi %s469_s14, %s579_s14   ;;  %s433_s13 = sphi %s467_s13, %s578_s13   ;;  %s429_s12 = sphi %s465_s12, %s577_s12  }
   0x4   : > { %s490_s18 = sadd.s32 1, %s441_s15   ;;  %s91_s19 = sadd.s32 1, %s437_s14 }
   0x5   : > { %s88_s20 = ssub.s32 %s441_s15, %s490_s18  ;;  %p101_p0 = scmp.ne.s32.totalorder %s437_s14, %s433_s13 }
   0x6   : > { %p89_p1 = scmp.eq.s32.totalorder %s88_s20, 0  ;;  %p102_p2 = scmp.eq.s32.totalorder %s486_s16, 1 }
   0x7   : > { %p107_p3 = scmp.ne.s32.totalorder %s433_s13, %s429_s12  ;;  %p108_p4 = scmp.eq.s32.totalorder %s321_s17, 1 }
   0x8   : > { %s501_s21 = scalar_select %p89_p1, %s437_s14, %s91_s19  }
   0x9   : > { %p503_p5 = por %p102_p2, %p101_p0  ;;  %p507_p6 = por %p108_p4, %p107_p3 }
   0xa   : > { %p324_p7 = scmp.ge.s32.totalorder %s441_s15, 1  ;;  %p140_p8 = scmp.lt.s32.totalorder %s441_s15, 3 }
   0xc   : > { %p141_p9 = pnand %p324_p7, %p140_p8 }
   0xd   : > { %p164_p10 = scmp.lt.s32.totalorder (!%p141_p9), %s486_s16, 1  ;;  %v443_v0 = vmov (!%p141_p9), 0   ;;  %v185_v1 = vld [vmem:[%s573_s2] sm:$0xff] (!%p141_p9)  ;;  %vm195_vm0 = vcmask (!%p141_p9), 1040384   ;;  %vm191_vm1 = vcmask (!%p141_p9), 15360   ;;  %s161_s6 = sand.u32 (!%p141_p9), 1, %s433_s13  }
   0xe   : > { %144 = sbr.rel (%p141_p9) target bundleno = 265 (0x109), region = 32  ;;  %234 = vmatprep.mubr.bf16.mxu0 (!%p141_p9), %v443_v0  ;;  %378 = vset.pattern.permute.xlu0 (!%p141_p9), %v443_v0  ;;  %v184_v7 = vld [vmem:[%s572_s1] sm:$0xf] (!%p141_p9)  ;;  %s325_s7 = sshll.u32 (!%p141_p9), %s161_s6, 4 }
   0xf   : > { %188 = vperm.xlu0 (!%p141_p9), %378, %v185_v1   ;;  %s337_s8 = sshll.u32 (!%p141_p9), %s486_s16, 8  ;;  %s163_s9 = scalar_lea.vmem (!%p141_p9), [#allocation2], %s325_s7 }
  0x10   : > { %s262_s10 = sshll.u32 (!%p141_p9), %s163_s9, 4  ;;  %s529_s19 = scalar_lea.hbm (!%p141_p9), %s574_s3, %s337_s8  ;;  %s531_s10 = int_to_ptr.vmem [resolvable:$true] %s262_s10 }
  0x11   : > { %s379_s20 = scalar_lea.vmem (!%p141_p9), %s531_s10, 256  ;;  %s444_s24 = smov (!%p141_p9), [#allocation2]  }
  0x12   : > { %p380_p11 = scmp.ne.s32.totalorder (!%p141_p9), %s531_s10, %s379_s20  ;;  %s383_s25 = sshll.u32 (!%p141_p9), %s444_s24, 4  ;;  %s384_s25 = int_to_ptr.vmem [resolvable:$false] %s383_s25 }
  0x13   : > { %p386_p0 = scmp.lt.s32.totalorder (!%p141_p9), %s531_s10, %s384_s25 }
  0x14   : > { %p381_p12 = pnand (!%p141_p9), %p380_p11, %p503_p5 }
  0x15   : > { %s165_s26 = scalar_select %p164_p10, %s486_s16, 1 }
  0x16   : > { %s248_s16 = scalar_lea.sflag [#allocation3], %s161_s6  ;;  %p382_p13 = pneg %p381_p12 }
  0x17   : > { %s336_s27 = sshll.u32 %s165_s26, 2  ;;  %s385_s26 = scalar_lea.vmem %s384_s25, 512 }
  0x18   : > { %s168_s30 = scalar_lea.vmem %s571_s0, %s336_s27  ;;  %p387_p1 = scmp.lt.s32.totalorder %s385_s26, %s379_s20 }
  0x19   : > { %v328_v2 = vld.sshfl [vmem:[%s168_s30] sm:$0x33 pattern:$0x76325410] }
  0x1a   : > { %v179_v3 = vcombine.high %v328_v2, %v328_v2  ;;  %v182_v4 = vpack.c.bf16 %v328_v2, %v328_v2  ;;  %p388_p2 = por %p387_p1, %p386_p0 }
  0x1c   : > { %v183_v5 = vpack.c.bf16 %v179_v3, %v179_v3  ;;  %v197_v6 = vsel %vm195_vm0, %v182_v4, 0  ;;  %p389_p3 = pnand %p388_p2, %p382_p13 }
  0x1e   : > { %329 = vmatprep.subr.msk.bf16.mxu0 %vm195_vm0, %v183_v5 }
  0x1f   : > { %203 = vmatpush1.bf16.msra.mxu0 %v197_v6 }
  0x22   : > { %330 = vmatmul.mubr.msk.bf16.vlgmr.msra.gmra.mrb[0].mxu0 %vm191_vm1, %v184_v7 }
  0x8e   : > { %v189_v8 = vpop.permute.xlu0 %188 }
  0xf5   : > { %v236_v9 = vpop.f32.mrb[0].mxu0 }
  0xf6   : > { %v237_v10 = vadd.f32 %v236_v9, %v189_v8  ;;  %v238_v11 = vpop.f32.mrb[1].mxu0 }
  0xf7   : > { %v239_v12 = vadd.f32 %v238_v11, %v189_v8  ;;  %v240_v13 = vpop.f32.mrb[2].mxu0 }
  0xf8   : > { %v243_v14 = vmax.f32 %v237_v10, 0.0  ;;  %v241_v15 = vpop.f32.mrb[3].mxu0 }
  0xf9   : > { %v244_v16 = vmax.f32 %v239_v12, 0.0 }
  0xfa   : > { %245 = vst [vmem:[%s163_s9] sm:$0xff] %v243_v14 }
  0xfb   : > { %246 = vst [vmem:[%s163_s9 + $0x8] sm:$0xff] %v244_v16 }
  0xfc   : > { %392 = shalt.err (!%p389_p3)
}
  0xfd   : > { %s393_s27 = scalar_lea.hbm %s529_s19, 256  ;;  %s397_s30 = scalar_lea.hbm %s574_s3, 512 }
  0xfe   : > { %p394_p4 = scmp.ne.s32.totalorder %s529_s19, %s393_s27  ;;  %p398_p9 = scmp.lt.u32.totalorder %s529_s19, %s574_s3 }
  0xff   : > { %p399_p10 = scmp.lt.u32.totalorder %s397_s30, %s393_s27  ;;  %p401_p12 = scmp.lt.u32.totalorder %s393_s27, %s529_s19 }
 0x100   : > { %p395_p7 = pnand %p394_p4, %p503_p5 }
 0x101   : > { %p400_p11 = por %p399_p10, %p398_p9 }
 0x102   : > { %p396_p8 = pneg %p395_p7 }
 0x103   : > { %p402_p13 = por %p401_p12, %p400_p11 }
 0x105   : > { %p403_p0 = pnand %p402_p13, %p396_p8 }
 0x107   : > { %406 = shalt.err (!%p403_p0)
}
 0x108   : > { %338 = dma.vmem_to_hbm [thread:$0]  (%p503_p5), %s531_s10, 256, %s529_s19, %s248_s16  }
 0x109 PF: > { %p344_p1 = scmp.ge.s32.totalorder %s441_s15, 2  ;;  %s274_s6 = sand.u32 1, %s429_s12  }
 0x10a   : > { %s275_s7 = scalar_lea.sflag [#allocation3], %s274_s6 }
 0x10b   : > { %p341_p2 = pnand %p344_p1, %p507_p6 }
 0x10d   : > { %424 = dma.done.wait (!%p341_p2), %s275_s7, 256  }
 0x10e   : > { %426 = vsyncadd (!%p341_p2), %s275_s7, 4294967040  ;;  %p13_p3 = scmp.ge.s32.totalorder %s490_s18, 4   ;;  %s577_s12 = smov %s433_s13 }
 0x10f   : > { %s578_s13 = smov %s437_s14  ;;  %s579_s14 = smov %s501_s21 }
 0x110   : > { %s580_s15 = smov %s490_s18  ;;  %15 = sbr.rel (!%p13_p3) target bundleno = 3 (0x3), region = 67 }
 0x117   :  { %280 = vsyncpa [#allocation3], 1 }
 0x118   :  { %282 = vsyncpa [#allocation3 + $0x1], 1 }

</bundles_post_ra>
